<compile_context>
chip_gen: v6e
topology: v6e:2x2x1
jax: 0.10.0
libtpu: 0.0.40
codegen_flags: <defaults>
</compile_context>

<pallas_src>
import functools
import math
from typing import NamedTuple, Tuple

import jax
import jax.numpy as jnp
from jax.experimental import pallas as pl
from jax.experimental.pallas import tpu as pltpu

_LANE = 128
_SUBLANE = 8


def _round_up(x, m):
    return ((x + m - 1) // m) * m


# ----------------------------- Pallas kernel --------------------------------

def _activation(y, activation: str):
    a = activation.lower()
    if a == "relu":
        return jnp.maximum(y, 0.0)
    elif a == "leaky_relu":
        # FullyConnectedLayer explicitly uses negative_slope=0.2.
        return jnp.where(y >= 0.0, y, 0.2 * y)
    elif a == "elu":
        return jnp.where(y > 0.0, y, jnp.expm1(y))
    elif a == "gelu":
        # PyTorch F.gelu default is the exact (erf-based) formulation.
        return jax.nn.gelu(y, approximate=False)
    elif a == "silu":
        return y * jax.nn.sigmoid(y)
    elif a == "tanh":
        return jnp.tanh(y)
    elif a == "sigmoid":
        return jax.nn.sigmoid(y)
    elif a == "linear":
        return y
    else:
        raise ValueError(f"Unsupported activation: {activation}")


def _mlp_kernel(*refs, layer_cfgs):
    """Fully fused MLP forward.

    refs layout: (x_ref, [w, b, (gamma, beta)?] per layer ..., o_ref)
    layer_cfgs:  tuple of (activation: str, use_layer_norm: bool, true_out: int)

    Padded weight columns / rows, bias, gamma and beta entries are zero, so:
      * padded output columns of each matmul are exactly zero,
      * LayerNorm sums over the padded width equal sums over the true width,
      * any garbage in padded activation columns (e.g. sigmoid(0)=0.5) is
        killed by the next layer's zero weight rows / the final slice.
    """
    x_ref = refs[0]
    o_ref = refs[-1]
    p = refs[1:-1]

    h = x_ref[...]                                   # bf16 (bb, in_pad)
    n_layers = len(layer_cfgs)
    i = 0
    for li, (act, use_ln, true_out) in enumerate(layer_cfgs):
        w = p[i][...]                                # bf16 (in_pad, out_pad)
        b = p[i + 1][...]                            # f32  (1, out_pad)
        i += 2
        # MXU in bf16, f32 accumulation; everything after stays f32 (VPU).
        y = jnp.dot(h, w, preferred_element_type=jnp.float32) + b
        if use_ln:
            g = p[i][...]                            # f32 (1, out_pad)
            bt = p[i + 1][...]
            i += 2
            # Single-pass stats over the true feature width (padded cols of y
            # are exactly zero, see docstring). eps matches nn.LayerNorm.
            inv_n = 1.0 / float(true_out)
            mean = jnp.sum(y, axis=-1, keepdims=True) * inv_n
            mean_sq = jnp.sum(y * y, axis=-1, keepdims=True) * inv_n
            var = mean_sq - mean * mean
            y = (y - mean) * jax.lax.rsqrt(var + 1e-5)
            y = y * g + bt                           # zero gamma/beta re-zero pads
        y = _activation(y, act)
        if li < n_layers - 1:
            h = y.astype(jnp.bfloat16)               # carried activation in bf16
        else:
            h = y                                    # final layer stays f32
    o_ref[...] = h.astype(o_ref.dtype)


# --------------------- One-time parameter preparation ------------------------

class MLPMeta(NamedTuple):
    d_in: int
    d_in_pad: int
    # per layer: (activation, use_layer_norm, true_out, in_pad, out_pad)
    layers: Tuple[Tuple[str, bool, int, int, int], ...]
    out_pad: int
    true_out: int


def prepare_mlp(params, *, activation_fn="linear", use_layer_norm=False):
    """Pad / cast parameters ONCE (hoisted out of the per-call forward).

    Returns (flat_params, meta): flat_params is a list of padded device
    arrays (bf16 weights, f32 bias/gamma/beta), meta is static layout info.
    """
    n_layers = len(params)
    d_in = int(params[0]["w"].shape[0])
    d_in_pad = _round_up(d_in, _LANE)

    flat = []
    layer_meta = []
    cur_in, cur_in_pad = d_in, d_in_pad
    for li, layer in enumerate(params):
        is_output = (li == n_layers - 1)
        act = "linear" if is_output else activation_fn
        use_ln = bool(use_layer_norm and (not is_output) and ("gamma" in layer))
        d_out = int(layer["w"].shape[1])
        d_out_pad = _round_up(d_out, _LANE)

        # Weights pre-transposed (in, out), zero-padded, bf16 for the MXU.
        w = jnp.zeros((cur_in_pad, d_out_pad), jnp.bfloat16)
        w = w.at[:cur_in, :d_out].set(layer["w"].astype(jnp.bfloat16))
        b = jnp.zeros((1, d_out_pad), jnp.float32)
        b = b.at[0, :d_out].set(layer["b"].astype(jnp.float32))
        flat += [w, b]
        if use_ln:
            g = jnp.zeros((1, d_out_pad), jnp.float32)
            g = g.at[0, :d_out].set(layer["gamma"].astype(jnp.float32))
            bt = jnp.zeros((1, d_out_pad), jnp.float32)
            bt = bt.at[0, :d_out].set(layer["beta"].astype(jnp.float32))
            flat += [g, bt]

        layer_meta.append((act, use_ln, d_out, cur_in_pad, d_out_pad))
        cur_in, cur_in_pad = d_out, d_out_pad

    meta = MLPMeta(d_in=d_in, d_in_pad=d_in_pad, layers=tuple(layer_meta),
                   out_pad=cur_in_pad, true_out=cur_in)
    return flat, meta


# ------------------------------ JAX wrapper ----------------------------------

def mlp_forward(flat_params, x, *, meta: MLPMeta, block_b=512):
    """Forward pass through all layers as a single fused Pallas kernel."""
    B, d_in = x.shape
    assert d_in == meta.d_in, (d_in, meta.d_in)

    # ---- static per-layer sizes / resident-weight VMEM footprint ----
    weight_vmem = 0
    max_pad = meta.d_in_pad
    for (_, use_ln, _, in_pad, out_pad) in meta.layers:
        weight_vmem += in_pad * out_pad * 2 + out_pad * 4        # bf16 w + f32 b
        if use_ln:
            weight_vmem += 2 * out_pad * 4                        # gamma, beta
        max_pad = max(max_pad, out_pad)

    def _footprint(bb):
        io = 2 * bb * meta.d_in_pad * 2 + 2 * bb * meta.out_pad * 4  # dbl-buf x/out
        temps = 4 * bb * max_pad * 4                                  # f32 temps
        return weight_vmem + io + temps

    # ---- batch tile: big (roofline), 8-aligned, minimal padding waste,
    #      shrunk if the v7x-safe VMEM budget (48 MiB) would be exceeded ----
    B8 = _round_up(B, _SUBLANE)
    budget = 48 << 20
    blk = max(_SUBLANE, min(block_b, B8))
    while blk > _SUBLANE and _footprint(blk) > budget:
        blk = _round_up(blk // 2, _SUBLANE)
    # TODO(synk): if the resident weights alone exceed the v7x VMEM budget
    # (very wide/deep stacks), split the layer stack across multiple
    # pallas_calls or pipeline weights from HBM instead of making all resident.

    num_tiles = -(-B8 // blk)
    bb = _round_up(-(-B8 // num_tiles), _SUBLANE)   # smallest 8-aligned tile
    B_pad = num_tiles * bb

    vmem_limit = int(_footprint(bb) * 1.25) + (2 << 20)
    vmem_limit = min(max(vmem_limit, 16 << 20), 100 << 20)

    # ---- pad & cast the (dynamic) input; bf16 halves first-layer DMA ----
    x_pad = jnp.zeros((B_pad, meta.d_in_pad), jnp.bfloat16)
    x_pad = x_pad.at[:B, :d_in].set(x.astype(jnp.bfloat16))

    flat_inputs = [x_pad]
    in_specs = [pl.BlockSpec((bb, meta.d_in_pad), lambda i: (i, 0))]

    flops = 0
    transcendentals = 0
    bytes_accessed = B_pad * meta.d_in_pad * 2
    transc_acts = {"elu", "gelu", "silu", "tanh", "sigmoid"}
    layer_cfgs = []

    pi = 0
    for (act, use_ln, d_out, in_pad, out_pad) in meta.layers:
        # Grid-invariant params -> single-buffered (halves their VMEM cost).
        in_specs.append(pl.BlockSpec((in_pad, out_pad), lambda i: (0, 0),
                                     pipeline_mode=pl.Buffered(1)))
        in_specs.append(pl.BlockSpec((1, out_pad), lambda i: (0, 0),
                                     pipeline_mode=pl.Buffered(1)))
        flat_inputs += [flat_params[pi], flat_params[pi + 1]]
        pi += 2
        bytes_accessed += in_pad * out_pad * 2 + out_pad * 4
        if use_ln:
            in_specs.append(pl.BlockSpec((1, out_pad), lambda i: (0, 0),
                                         pipeline_mode=pl.Buffered(1)))
            in_specs.append(pl.BlockSpec((1, out_pad), lambda i: (0, 0),
                                         pipeline_mode=pl.Buffered(1)))
            flat_inputs += [flat_params[pi], flat_params[pi + 1]]
            pi += 2
            bytes_accessed += 2 * out_pad * 4
        flops += 2 * B_pad * in_pad * out_pad
        if act.lower() in transc_acts:
            transcendentals += B_pad * out_pad
        layer_cfgs.append((act, use_ln, d_out))
    layer_cfgs = tuple(layer_cfgs)
    bytes_accessed += B_pad * meta.out_pad * 4

    kernel = functools.partial(_mlp_kernel, layer_cfgs=layer_cfgs)

    out = pl.pallas_call(
        kernel,
        out_shape=jax.ShapeDtypeStruct((B_pad, meta.out_pad), jnp.float32),
        grid=(num_tiles,),
        in_specs=in_specs,
        out_specs=pl.BlockSpec((bb, meta.out_pad), lambda i: (i, 0)),
        compiler_params=pltpu.CompilerParams(
            dimension_semantics=("parallel",),
            vmem_limit_bytes=vmem_limit),
        cost_estimate=pl.CostEstimate(
            flops=flops,
            transcendentals=transcendentals,
            bytes_accessed=bytes_accessed),
    )(*flat_inputs)

    # Strip batch / lane padding in JAX (cheap slice).
    return out[:B, :meta.true_out]
    # TODO(synk): dropout (train-mode RNG) and BatchNorm1d running-stat updates
    # are training-time behaviors; this reproduces eval-mode / dropout=0 semantics.


# ------------------------- Parameter initialization --------------------------

def _xavier_uniform(key, in_features, out_features):
    # Matches torch.nn.init.xavier_uniform_ on a (out, in) weight; stored (in, out).
    bound = math.sqrt(6.0 / (in_features + out_features))
    return jax.random.uniform(
        key, (in_features, out_features), jnp.float32, -bound, bound)


def _bias_init(key, in_features, out_features):
    bound = 1.0 / math.sqrt(in_features)
    return jax.random.uniform(key, (out_features,), jnp.float32, -bound, bound)


def build_mlp_params(key, input_dim, num_classes, hidden_units,
                     use_layer_norm=False, is_binary=False):
    """Deterministic param construction mirroring MLP.__init__."""
    params = []
    dims = [input_dim] + list(hidden_units)
    output_dim = 1 if is_binary else num_classes

    for i, h in enumerate(hidden_units):
        key, kw, kb = jax.random.split(key, 3)
        layer = {
            "w": _xavier_uniform(kw, dims[i], h),
            "b": _bias_init(kb, dims[i], h),
        }
        if use_layer_norm:
            layer["gamma"] = jnp.ones((h,), jnp.float32)
            layer["beta"] = jnp.zeros((h,), jnp.float32)
        params.append(layer)

    # Output layer: always linear activation, no norms, no dropout.
    key, kw, kb = jax.random.split(key, 3)
    params.append({
        "w": _xavier_uniform(kw, dims[-1], output_dim),
        "b": _bias_init(kb, dims[-1], output_dim),
    })
    return params


# --------------------------------- main --------------------------------------

if __name__ == "__main__":
    # Config consistent with the module's forward:
    #   MLP(input_dim=32, num_classes=10, hidden_units=[64, 32],
    #       activation_fn='relu', use_layer_norm=True, dropout_rate=0.0)
    input_dim = 32
    num_classes = 10
    hidden_units = [64, 32]
    activation_fn = "relu"
    use_layer_norm = True
    batch = 8

    key = jax.random.PRNGKey(0)
    key, kx, kp = jax.random.split(key, 3)

    x = jax.random.normal(kx, (batch, input_dim), jnp.float32)
    params = build_mlp_params(kp, input_dim, num_classes, hidden_units,
                              use_layer_norm=use_layer_norm, is_binary=False)

    # One-time padding / casting of parameters (outside the jitted forward).
    flat_params, meta = prepare_mlp(params, activation_fn=activation_fn,
                                    use_layer_norm=use_layer_norm)

    fwd = jax.jit(functools.partial(mlp_forward, meta=meta))

    out = fwd(flat_params, x)
    jax.block_until_ready(out)

    assert out.shape == (batch, num_classes), out.shape
    assert out.dtype == jnp.float32
    assert bool(jnp.all(jnp.isfinite(out)))

    print("KERNEL_OK")
</pallas_src>

<mosaic_0001>
module attributes {stable_mosaic.version = 11 : i64} {
  func.func @_mlp_kernel(%arg0: i32, %arg1: memref<8x128xbf16, #tpu.memory_space<vmem>>, %arg2: memref<128x128xbf16, #tpu.memory_space<vmem>>, %arg3: memref<1x128xf32, #tpu.memory_space<vmem>>, %arg4: memref<1x128xf32, #tpu.memory_space<vmem>>, %arg5: memref<1x128xf32, #tpu.memory_space<vmem>>, %arg6: memref<128x128xbf16, #tpu.memory_space<vmem>>, %arg7: memref<1x128xf32, #tpu.memory_space<vmem>>, %arg8: memref<1x128xf32, #tpu.memory_space<vmem>>, %arg9: memref<1x128xf32, #tpu.memory_space<vmem>>, %arg10: memref<128x128xbf16, #tpu.memory_space<vmem>>, %arg11: memref<1x128xf32, #tpu.memory_space<vmem>>, %arg12: memref<8x128xf32, #tpu.memory_space<vmem>>) attributes {dimension_semantics = [#tpu.dimension_semantics<parallel>], iteration_bounds = array<i64: 1>, scalar_prefetch = 0 : i64, scratch_operands = 0 : i64, tpu.core_type = #tpu.core_type<tc>, window_params = [{transform_indices = @transform_0, window_bounds = array<i64: 8, 128>}, {pipeline_mode = #tpu.pipeline_mode<synchronous>, transform_indices = @transform_1, window_bounds = array<i64: 128, 128>}, {pipeline_mode = #tpu.pipeline_mode<synchronous>, transform_indices = @transform_2, window_bounds = array<i64: 1, 128>}, {pipeline_mode = #tpu.pipeline_mode<synchronous>, transform_indices = @transform_3, window_bounds = array<i64: 1, 128>}, {pipeline_mode = #tpu.pipeline_mode<synchronous>, transform_indices = @transform_4, window_bounds = array<i64: 1, 128>}, {pipeline_mode = #tpu.pipeline_mode<synchronous>, transform_indices = @transform_5, window_bounds = array<i64: 128, 128>}, {pipeline_mode = #tpu.pipeline_mode<synchronous>, transform_indices = @transform_6, window_bounds = array<i64: 1, 128>}, {pipeline_mode = #tpu.pipeline_mode<synchronous>, transform_indices = @transform_7, window_bounds = array<i64: 1, 128>}, {pipeline_mode = #tpu.pipeline_mode<synchronous>, transform_indices = @transform_8, window_bounds = array<i64: 1, 128>}, {pipeline_mode = #tpu.pipeline_mode<synchronous>, transform_indices = @transform_9, window_bounds = array<i64: 128, 128>}, {pipeline_mode = #tpu.pipeline_mode<synchronous>, transform_indices = @transform_10, window_bounds = array<i64: 1, 128>}, {transform_indices = @transform_11, window_bounds = array<i64: 8, 128>}]} {
    %c0 = arith.constant 0 : index
    %c0_0 = arith.constant 0 : index
    %0 = vector.load %arg1[%c0, %c0_0] : memref<8x128xbf16, #tpu.memory_space<vmem>>, vector<8x128xbf16>
    %c0_1 = arith.constant 0 : index
    %c0_2 = arith.constant 0 : index
    %1 = vector.load %arg2[%c0_1, %c0_2] : memref<128x128xbf16, #tpu.memory_space<vmem>>, vector<128x128xbf16>
    %c0_3 = arith.constant 0 : index
    %c0_4 = arith.constant 0 : index
    %2 = vector.load %arg3[%c0_3, %c0_4] : memref<1x128xf32, #tpu.memory_space<vmem>>, vector<1x128xf32>
    %cst = arith.constant dense<0.000000e+00> : vector<8x128xf32>
    %3 = tpu.matmul %0, %1, %cst {dimension_numbers = #tpu.dot_dimension_numbers<[1], [0], [0], [1], [0, 0, 1, 1], [], []>} : vector<8x128xbf16>, vector<128x128xbf16>, vector<8x128xf32> -> vector<8x128xf32>
    %4 = vector.broadcast %2 : vector<1x128xf32> to vector<8x128xf32>
    %5 = arith.addf %3, %4 : vector<8x128xf32>
    %c0_5 = arith.constant 0 : index
    %c0_6 = arith.constant 0 : index
    %6 = vector.load %arg4[%c0_5, %c0_6] : memref<1x128xf32, #tpu.memory_space<vmem>>, vector<1x128xf32>
    %c0_7 = arith.constant 0 : index
    %c0_8 = arith.constant 0 : index
    %7 = vector.load %arg5[%c0_7, %c0_8] : memref<1x128xf32, #tpu.memory_space<vmem>>, vector<1x128xf32>
    %cst_9 = arith.constant dense<0.000000e+00> : vector<8xf32>
    %8 = vector.multi_reduction <add>, %5, %cst_9 [1] : vector<8x128xf32> to vector<8xf32>
    %9 = vector.shape_cast %8 : vector<8xf32> to vector<8x1xf32>
    %cst_10 = arith.constant 1.562500e-02 : f32
    %10 = vector.broadcast %cst_10 : f32 to vector<8x1xf32>
    %11 = arith.mulf %9, %10 : vector<8x1xf32>
    %12 = arith.mulf %5, %5 : vector<8x128xf32>
    %cst_11 = arith.constant dense<0.000000e+00> : vector<8xf32>
    %13 = vector.multi_reduction <add>, %12, %cst_11 [1] : vector<8x128xf32> to vector<8xf32>
    %14 = vector.shape_cast %13 : vector<8xf32> to vector<8x1xf32>
    %cst_12 = arith.constant 1.562500e-02 : f32
    %15 = vector.broadcast %cst_12 : f32 to vector<8x1xf32>
    %16 = arith.mulf %14, %15 : vector<8x1xf32>
    %17 = arith.mulf %11, %11 : vector<8x1xf32>
    %18 = arith.subf %16, %17 : vector<8x1xf32>
    %19 = vector.broadcast %11 : vector<8x1xf32> to vector<8x128xf32>
    %20 = arith.subf %5, %19 : vector<8x128xf32>
    %cst_13 = arith.constant 9.99999974E-6 : f32
    %21 = vector.broadcast %cst_13 : f32 to vector<8x1xf32>
    %22 = arith.addf %18, %21 : vector<8x1xf32>
    %23 = math.rsqrt %22 : vector<8x1xf32>
    %24 = vector.broadcast %23 : vector<8x1xf32> to vector<8x128xf32>
    %25 = arith.mulf %20, %24 : vector<8x128xf32>
    %26 = vector.broadcast %6 : vector<1x128xf32> to vector<8x128xf32>
    %27 = arith.mulf %25, %26 : vector<8x128xf32>
    %28 = vector.broadcast %7 : vector<1x128xf32> to vector<8x128xf32>
    %29 = arith.addf %27, %28 : vector<8x128xf32>
    %cst_14 = arith.constant 0.000000e+00 : f32
    %30 = vector.broadcast %cst_14 : f32 to vector<8x128xf32>
    %31 = arith.maximumf %29, %30 : vector<8x128xf32>
    %32 = arith.truncf %31 : vector<8x128xf32> to vector<8x128xbf16>
    %c0_15 = arith.constant 0 : index
    %c0_16 = arith.constant 0 : index
    %33 = vector.load %arg6[%c0_15, %c0_16] : memref<128x128xbf16, #tpu.memory_space<vmem>>, vector<128x128xbf16>
    %c0_17 = arith.constant 0 : index
    %c0_18 = arith.constant 0 : index
    %34 = vector.load %arg7[%c0_17, %c0_18] : memref<1x128xf32, #tpu.memory_space<vmem>>, vector<1x128xf32>
    %cst_19 = arith.constant dense<0.000000e+00> : vector<8x128xf32>
    %35 = tpu.matmul %32, %33, %cst_19 {dimension_numbers = #tpu.dot_dimension_numbers<[1], [0], [0], [1], [0, 0, 1, 1], [], []>} : vector<8x128xbf16>, vector<128x128xbf16>, vector<8x128xf32> -> vector<8x128xf32>
    %36 = vector.broadcast %34 : vector<1x128xf32> to vector<8x128xf32>
    %37 = arith.addf %35, %36 : vector<8x128xf32>
    %c0_20 = arith.constant 0 : index
    %c0_21 = arith.constant 0 : index
    %38 = vector.load %arg8[%c0_20, %c0_21] : memref<1x128xf32, #tpu.memory_space<vmem>>, vector<1x128xf32>
    %c0_22 = arith.constant 0 : index
    %c0_23 = arith.constant 0 : index
    %39 = vector.load %arg9[%c0_22, %c0_23] : memref<1x128xf32, #tpu.memory_space<vmem>>, vector<1x128xf32>
    %cst_24 = arith.constant dense<0.000000e+00> : vector<8xf32>
    %40 = vector.multi_reduction <add>, %37, %cst_24 [1] : vector<8x128xf32> to vector<8xf32>
    %41 = vector.shape_cast %40 : vector<8xf32> to vector<8x1xf32>
    %cst_25 = arith.constant 3.125000e-02 : f32
    %42 = vector.broadcast %cst_25 : f32 to vector<8x1xf32>
    %43 = arith.mulf %41, %42 : vector<8x1xf32>
    %44 = arith.mulf %37, %37 : vector<8x128xf32>
    %cst_26 = arith.constant dense<0.000000e+00> : vector<8xf32>
    %45 = vector.multi_reduction <add>, %44, %cst_26 [1] : vector<8x128xf32> to vector<8xf32>
    %46 = vector.shape_cast %45 : vector<8xf32> to vector<8x1xf32>
    %cst_27 = arith.constant 3.125000e-02 : f32
    %47 = vector.broadcast %cst_27 : f32 to vector<8x1xf32>
    %48 = arith.mulf %46, %47 : vector<8x1xf32>
    %49 = arith.mulf %43, %43 : vector<8x1xf32>
    %50 = arith.subf %48, %49 : vector<8x1xf32>
    %51 = vector.broadcast %43 : vector<8x1xf32> to vector<8x128xf32>
    %52 = arith.subf %37, %51 : vector<8x128xf32>
    %cst_28 = arith.constant 9.99999974E-6 : f32
    %53 = vector.broadcast %cst_28 : f32 to vector<8x1xf32>
    %54 = arith.addf %50, %53 : vector<8x1xf32>
    %55 = math.rsqrt %54 : vector<8x1xf32>
    %56 = vector.broadcast %55 : vector<8x1xf32> to vector<8x128xf32>
    %57 = arith.mulf %52, %56 : vector<8x128xf32>
    %58 = vector.broadcast %38 : vector<1x128xf32> to vector<8x128xf32>
    %59 = arith.mulf %57, %58 : vector<8x128xf32>
    %60 = vector.broadcast %39 : vector<1x128xf32> to vector<8x128xf32>
    %61 = arith.addf %59, %60 : vector<8x128xf32>
    %cst_29 = arith.constant 0.000000e+00 : f32
    %62 = vector.broadcast %cst_29 : f32 to vector<8x128xf32>
    %63 = arith.maximumf %61, %62 : vector<8x128xf32>
    %64 = arith.truncf %63 : vector<8x128xf32> to vector<8x128xbf16>
    %c0_30 = arith.constant 0 : index
    %c0_31 = arith.constant 0 : index
    %65 = vector.load %arg10[%c0_30, %c0_31] : memref<128x128xbf16, #tpu.memory_space<vmem>>, vector<128x128xbf16>
    %c0_32 = arith.constant 0 : index
    %c0_33 = arith.constant 0 : index
    %66 = vector.load %arg11[%c0_32, %c0_33] : memref<1x128xf32, #tpu.memory_space<vmem>>, vector<1x128xf32>
    %cst_34 = arith.constant dense<0.000000e+00> : vector<8x128xf32>
    %67 = tpu.matmul %64, %65, %cst_34 {dimension_numbers = #tpu.dot_dimension_numbers<[1], [0], [0], [1], [0, 0, 1, 1], [], []>} : vector<8x128xbf16>, vector<128x128xbf16>, vector<8x128xf32> -> vector<8x128xf32>
    %68 = vector.broadcast %66 : vector<1x128xf32> to vector<8x128xf32>
    %69 = arith.addf %67, %68 : vector<8x128xf32>
    %c0_35 = arith.constant 0 : index
    %c0_36 = arith.constant 0 : index
    %70 = vector.load %arg12[%c0_35, %c0_36] : memref<8x128xf32, #tpu.memory_space<vmem>>, vector<8x128xf32>
    tpu.vector_store %arg12[%c0_35, %c0_36], %69 {strides = array<i32>} : memref<8x128xf32, #tpu.memory_space<vmem>>, vector<8x128xf32>,
    return
  }
  func.func @transform_0(%arg0: i32) -> (i32, i32) {
    %c0_i32 = arith.constant 0 : i32
    %c0_i32_0 = arith.constant 0 : i32
    return %arg0, %c0_i32 : i32, i32
  }
  func.func @transform_1(%arg0: i32) -> (i32, i32) {
    %c0_i32 = arith.constant 0 : i32
    %c0_i32_0 = arith.constant 0 : i32
    %c0_i32_1 = arith.constant 0 : i32
    return %c0_i32, %c0_i32_0 : i32, i32
  }
  func.func @transform_2(%arg0: i32) -> (i32, i32) {
    %c0_i32 = arith.constant 0 : i32
    %c0_i32_0 = arith.constant 0 : i32
    %c0_i32_1 = arith.constant 0 : i32
    return %c0_i32, %c0_i32_0 : i32, i32
  }
  func.func @transform_3(%arg0: i32) -> (i32, i32) {
    %c0_i32 = arith.constant 0 : i32
    %c0_i32_0 = arith.constant 0 : i32
    %c0_i32_1 = arith.constant 0 : i32
    return %c0_i32, %c0_i32_0 : i32, i32
  }
  func.func @transform_4(%arg0: i32) -> (i32, i32) {
    %c0_i32 = arith.constant 0 : i32
    %c0_i32_0 = arith.constant 0 : i32
    %c0_i32_1 = arith.constant 0 : i32
    return %c0_i32, %c0_i32_0 : i32, i32
  }
  func.func @transform_5(%arg0: i32) -> (i32, i32) {
    %c0_i32 = arith.constant 0 : i32
    %c0_i32_0 = arith.constant 0 : i32
    %c0_i32_1 = arith.constant 0 : i32
    return %c0_i32, %c0_i32_0 : i32, i32
  }
  func.func @transform_6(%arg0: i32) -> (i32, i32) {
    %c0_i32 = arith.constant 0 : i32
    %c0_i32_0 = arith.constant 0 : i32
    %c0_i32_1 = arith.constant 0 : i32
    return %c0_i32, %c0_i32_0 : i32, i32
  }
  func.func @transform_7(%arg0: i32) -> (i32, i32) {
    %c0_i32 = arith.constant 0 : i32
    %c0_i32_0 = arith.constant 0 : i32
    %c0_i32_1 = arith.constant 0 : i32
    return %c0_i32, %c0_i32_0 : i32, i32
  }
  func.func @transform_8(%arg0: i32) -> (i32, i32) {
    %c0_i32 = arith.constant 0 : i32
    %c0_i32_0 = arith.constant 0 : i32
    %c0_i32_1 = arith.constant 0 : i32
    return %c0_i32, %c0_i32_0 : i32, i32
  }
  func.func @transform_9(%arg0: i32) -> (i32, i32) {
    %c0_i32 = arith.constant 0 : i32
    %c0_i32_0 = arith.constant 0 : i32
    %c0_i32_1 = arith.constant 0 : i32
    return %c0_i32, %c0_i32_0 : i32, i32
  }
  func.func @transform_10(%arg0: i32) -> (i32, i32) {
    %c0_i32 = arith.constant 0 : i32
    %c0_i32_0 = arith.constant 0 : i32
    %c0_i32_1 = arith.constant 0 : i32
    return %c0_i32, %c0_i32_0 : i32, i32
  }
  func.func @transform_11(%arg0: i32) -> (i32, i32) {
    %c0_i32 = arith.constant 0 : i32
    %c0_i32_0 = arith.constant 0 : i32
    return %arg0, %c0_i32 : i32, i32
  }
}

</mosaic_0001>

<bundles_post_ra>
// kernel: mlp_forward.1
= control target key start
LH: loop header
LB: loop body
LE: loop exit
PB: predicated region body
PF: predicated region fallthrough
CT: control target
= control target key end

     0   :  { %16 = vsyncpa [#allocation3], 0  ;;  %s868_s0 = inlined_call_operand.vmem [shape: bf16[8,128], index: 0, kind: input, shape index: {}]   ;;  %s869_s1 = inlined_call_operand.hbm [shape: bf16[128,128], index: 1, kind: input, shape index: {}]   ;;  %s870_s2 = inlined_call_operand.vmem [shape: f32[1,128], index: 2, kind: input, shape index: {}]   ;;  %s871_s3 = inlined_call_operand.vmem [shape: f32[1,128], index: 3, kind: input, shape index: {}]   ;;  %s872_s4 = inlined_call_operand.vmem [shape: f32[1,128], index: 4, kind: input, shape index: {}]   ;;  %s873_s5 = inlined_call_operand.hbm [shape: bf16[128,128], index: 5, kind: input, shape index: {}]   ;;  %s874_s6 = inlined_call_operand.vmem [shape: f32[1,128], index: 6, kind: input, shape index: {}]   ;;  %s875_s7 = inlined_call_operand.vmem [shape: f32[1,128], index: 7, kind: input, shape index: {}]   ;;  %s876_s8 = inlined_call_operand.vmem [shape: f32[1,128], index: 8, kind: input, shape index: {}]   ;;  %s877_s9 = inlined_call_operand.hbm [shape: bf16[128,128], index: 9, kind: input, shape index: {}]   ;;  %s878_s10 = inlined_call_operand.vmem [shape: f32[1,128], index: 10, kind: input, shape index: {}]   ;;  %s879_s11 = inlined_call_operand.hbm [shape: f32[8,128], index: 11, kind: output, shape index: {}]  }
   0x1   :  { %17 = vsyncpa [#allocation6], 0 }
   0x2   :  { %18 = vsyncpa [#allocation4], 0  ;;  %s734_s17 = smov [#allocation5]   ;;  %s735_s19 = smov [#allocation2]  }
   0x3   :  { %s44_s18 = sshll.u32 %s734_s17, 4  ;;  %s26_s20 = sshll.u32 %s735_s19, 4  ;;  %s45_s18 = int_to_ptr.vmem [resolvable:$true] %s44_s18  ;;  %s27_s20 = int_to_ptr.vmem [resolvable:$true] %s26_s20 }
   0x4   :  { %s656_s21 = scalar_lea.vmem %s45_s18, 1024  ;;  %p661_p1 = scmp.lt.s32.totalorder %s45_s18, %s45_s18 }
   0x5   :  { %p657_p0 = scmp.ne.s32.totalorder %s45_s18, %s656_s21  ;;  %p662_p2 = scmp.lt.s32.totalorder %s656_s21, %s656_s21 }
   0x7   :  { %p663_p3 = por %p662_p2, %p661_p1 }
   0x9   :  { %p664_p4 = pnand %p663_p3, %p657_p0 }
   0xb   :  { %667 = shalt.err (!%p664_p4)
}
   0xc   :  { %s736_s22 = smov 64   ;;  %s737_s23 = smov 4  }
   0xd   :  { %50 = dma.hbm_to_vmem [thread:$0]  %s873_s5, 1024, %s45_s18, [#allocation6], %s736_s22, %s736_s22, %s737_s23  }
   0xe   :  { %s676_s26 = scalar_lea.vmem %s27_s20, 1024  ;;  %p681_p6 = scmp.lt.s32.totalorder %s27_s20, %s27_s20 }
   0xf   :  { %p677_p5 = scmp.ne.s32.totalorder %s27_s20, %s676_s26  ;;  %p682_p7 = scmp.lt.s32.totalorder %s676_s26, %s676_s26 }
  0x11   :  { %p683_p8 = por %p682_p7, %p681_p6 }
  0x13   :  { %p684_p9 = pnand %p683_p8, %p677_p5 }
  0x15   :  { %687 = shalt.err (!%p684_p9)
}
  0x16   :  { %32 = dma.hbm_to_vmem [thread:$0]  %s869_s1, 1024, %s27_s20, [#allocation3], %s736_s22, %s736_s22, %s737_s23  }
  0x17   :  { %s738_s29 = smov [#allocation7]  }
  0x18   :  { %s62_s30 = sshll.u32 %s738_s29, 4  ;;  %s63_s30 = int_to_ptr.vmem [resolvable:$true] %s62_s30 }
  0x19   :  { %s696_s12 = scalar_lea.vmem %s63_s30, 1024  ;;  %p701_p11 = scmp.lt.s32.totalorder %s63_s30, %s63_s30 }
  0x1a   :  { %p697_p10 = scmp.ne.s32.totalorder %s63_s30, %s696_s12  ;;  %p702_p12 = scmp.lt.s32.totalorder %s696_s12, %s696_s12 }
  0x1c   :  { %p703_p13 = por %p702_p12, %p701_p11 }
  0x1e   :  { %p704_p0 = pnand %p703_p13, %p697_p10 }
  0x20   :  { %707 = shalt.err (!%p704_p0)
}
  0x21   :  { %68 = dma.hbm_to_vmem [thread:$0]  %s877_s9, 1024, %s63_s30, [#allocation6], %s736_s22, %s736_s22, %s737_s23  }
  0x22   :  { %728 = dma.done.wait [#allocation3], 1024  }
  0x23   :  { %729 = vsyncadd [#allocation3], 4294966272 }
  0x24   :  { %730 = dma.done.wait [#allocation6], 2048  }
  0x25   :  { %731 = vsyncadd [#allocation6], 4294965248  ;;  %v739_v0 = vmov 0.0   ;;  %vm740_vm0 = vmmov 0   ;;  %v620_v1 = vld [vmem:[#allocation2 + $0x38] sm:$0xff]   ;;  %v621_v2 = vld [vmem:[#allocation2 + $0x30] sm:$0xff]  }
  0x26   :  { %552 = vmatprep.subr.bf16.mxu0 %v739_v0  ;;  %568 = vmatprep.mubr.msk.bf16.mxu0 %vm740_vm0, %v739_v0  ;;  %v622_v3 = vld [vmem:[#allocation2 + $0x28] sm:$0xff]   ;;  %v623_v4 = vld [vmem:[#allocation2 + $0x20] sm:$0xff]   ;;  %v624_v5 = vld [vmem:[#allocation2 + $0x18] sm:$0xff]   ;;  %s741_s23 = smov [#allocation8]  }
  0x27   :  { %572 = vmatprep.subr.bf16.mxu1 %v739_v0  ;;  %588 = vmatprep.mubr.msk.bf16.mxu1 %vm740_vm0, %v739_v0  ;;  %v625_v6 = vld [vmem:[#allocation2 + $0x10] sm:$0xff]   ;;  %v626_v7 = vld [vmem:[#allocation2 + $0x8] sm:$0xff]   ;;  %v627_v8 = vld [vmem:[#allocation2] sm:$0xff]   ;;  %s484_s24 = sshll.u32 %s741_s23, 4  ;;  %s485_s24 = int_to_ptr.vmem [resolvable:$true] %s484_s24 }
  0x28   :  { %553 = vmatpush3.bf16.msra.mxu0 %v620_v1  ;;  %v81_v9 = vld [vmem:[%s868_s0] sm:$0xf]  ;;  %v628_v17 = vld [vmem:[#allocation5 + $0x38] sm:$0xff]   ;;  %v629_v18 = vld [vmem:[#allocation5 + $0x30] sm:$0xff]   ;;  %p713_p2 = scmp.lt.s32.totalorder %s485_s24, %s485_s24 }
  0x29   :  { %554 = vmatprep.subr.bf16.mxu0 %v739_v0  ;;  %v494_v10 = vld [vmem:[%s870_s2] ss:$0 sm:$0xff]  ;;  %573 = vmatpush3.bf16.msra.mxu1 %v628_v17  ;;  %v630_v19 = vld [vmem:[#allocation5 + $0x28] sm:$0xff]   ;;  %v632_v21 = vld [vmem:[#allocation5 + $0x18] sm:$0xff]  }
  0x2a   :  { %574 = vmatprep.subr.bf16.mxu1 %v739_v0  ;;  %v631_v20 = vld [vmem:[#allocation5 + $0x20] sm:$0xff]   ;;  %v633_v22 = vld [vmem:[#allocation5 + $0x10] sm:$0xff]   ;;  %v634_v23 = vld [vmem:[#allocation5 + $0x8] sm:$0xff]  }
  0x2b   :  { %v635_v24 = vld [vmem:[#allocation5] sm:$0xff]   ;;  %v636_v48 = vld [vmem:[#allocation7 + $0x38] sm:$0xff]   ;;  %v637_v49 = vld [vmem:[#allocation7 + $0x30] sm:$0xff]  }
  0x2c   :  { %555 = vmatpush3.bf16.msra.mxu0 %v621_v2  ;;  %v503_v34 = vld [vmem:[%s871_s3] ss:$0 sm:$0xff]  ;;  %v638_v50 = vld [vmem:[#allocation7 + $0x28] sm:$0xff]   ;;  %v640_v52 = vld [vmem:[#allocation7 + $0x18] sm:$0xff]  }
  0x2d   :  { %556 = vmatprep.subr.bf16.mxu0 %v739_v0  ;;  %575 = vmatpush3.bf16.msra.mxu1 %v629_v18  ;;  %v504_v36 = vld [vmem:[%s872_s4] ss:$0 sm:$0xff]  ;;  %v641_v53 = vld [vmem:[#allocation7 + $0x10] sm:$0xff]   ;;  %v642_v54 = vld [vmem:[#allocation7 + $0x8] sm:$0xff]  }
  0x2e   :  { %576 = vmatprep.subr.bf16.mxu1 %v739_v0  ;;  %v505_v41 = vld [vmem:[%s874_s6] ss:$0 sm:$0xff] }
  0x2f   :  { %v639_v51 = vld [vmem:[#allocation7 + $0x20] sm:$0xff]  }
  0x30   :  { %557 = vmatpush3.bf16.msra.mxu0 %v622_v3  ;;  %v643_v55 = vld [vmem:[#allocation7] sm:$0xff]  }
  0x31   :  { %558 = vmatprep.subr.bf16.mxu0 %v739_v0  ;;  %577 = vmatpush3.bf16.msra.mxu1 %v630_v19  ;;  %v514_v2 = vld [vmem:[%s875_s7] ss:$0 sm:$0xff]  ;;  %s708_s7 = scalar_lea.vmem %s485_s24, 128 }
  0x32   :  { %578 = vmatprep.subr.bf16.mxu1 %v739_v0  ;;  %p709_p1 = scmp.ne.s32.totalorder %s485_s24, %s708_s7  ;;  %p714_p3 = scmp.lt.s32.totalorder %s708_s7, %s708_s7 }
  0x34   :  { %559 = vmatpush3.bf16.msra.mxu0 %v623_v4  ;;  %p715_p4 = por %p714_p3, %p713_p2 }
  0x35   :  { %560 = vmatprep.subr.bf16.mxu0 %v739_v0  ;;  %579 = vmatpush3.bf16.msra.mxu1 %v631_v20 }
  0x36   :  { %580 = vmatprep.subr.bf16.mxu1 %v739_v0  ;;  %p716_p5 = pnand %p715_p4, %p709_p1 }
  0x38   :  { %561 = vmatpush3.bf16.msra.mxu0 %v624_v5 }
  0x39   :  { %562 = vmatprep.subr.bf16.mxu0 %v739_v0  ;;  %581 = vmatpush3.bf16.msra.mxu1 %v632_v21 }
  0x3a   :  { %582 = vmatprep.subr.bf16.mxu1 %v739_v0 }
  0x3c   :  { %563 = vmatpush3.bf16.msra.mxu0 %v625_v6 }
  0x3d   :  { %564 = vmatprep.subr.bf16.mxu0 %v739_v0  ;;  %583 = vmatpush3.bf16.msra.mxu1 %v633_v22 }
  0x3e   :  { %584 = vmatprep.subr.bf16.mxu1 %v739_v0 }
  0x40   :  { %565 = vmatpush3.bf16.msra.mxu0 %v626_v7 }
  0x41   :  { %566 = vmatprep.subr.bf16.mxu0 %v739_v0  ;;  %585 = vmatpush3.bf16.msra.mxu1 %v634_v23 }
  0x42   :  { %586 = vmatprep.subr.bf16.mxu1 %v739_v0 }
  0x44   :  { %567 = vmatpush3.bf16.msra.mxu0 %v627_v8  ;;  %v516_v8 = vld [vmem:[%s878_s10] ss:$0 sm:$0xff] }
  0x45   :  { %592 = vmatprep.subr.bf16.mxu0 %v739_v0  ;;  %587 = vmatpush3.bf16.msra.mxu1 %v635_v24 }
  0x47   :  { %569 = vmatmul.mubr.bf16.vlgmr.msra.gmra.mxu0 %v81_v9 }
  0x48   :  { %608 = vmatprep.mubr.msk.bf16.mxu0 %vm740_vm0, %v739_v0  ;;  %593 = vmatpush3.bf16.msra.mxu0 %v636_v48 }
  0x49   :  { %594 = vmatprep.subr.bf16.mxu0 %v739_v0 }
  0x4c   :  { %595 = vmatpush3.bf16.msra.mxu0 %v637_v49 }
  0x4d   :  { %596 = vmatprep.subr.bf16.mxu0 %v739_v0 }
  0x50   :  { %597 = vmatpush3.bf16.msra.mxu0 %v638_v50 }
  0x51   :  { %598 = vmatprep.subr.bf16.mxu0 %v739_v0 }
  0x54   :  { %599 = vmatpush3.bf16.msra.mxu0 %v639_v51 }
  0x55   :  { %600 = vmatprep.subr.bf16.mxu0 %v739_v0 }
  0x58   :  { %601 = vmatpush3.bf16.msra.mxu0 %v640_v52 }
  0x59   :  { %602 = vmatprep.subr.bf16.mxu0 %v739_v0 }
  0x5c   :  { %603 = vmatpush3.bf16.msra.mxu0 %v641_v53 }
  0x5d   :  { %604 = vmatprep.subr.bf16.mxu0 %v739_v0 }
  0x60   :  { %605 = vmatpush3.bf16.msra.mxu0 %v642_v54 }
  0x61   :  { %606 = vmatprep.subr.bf16.mxu0 %v739_v0  ;;  %v515_v0 = vld [vmem:[%s876_s8] ss:$0 sm:$0xff] }
  0x64   :  { %607 = vmatpush3.bf16.msra.mxu0 %v643_v55 }
 0x107   :  { %v187_v11 = vpop.f32.mrf.mxu0 }
 0x108   :  { %v188_v12 = vadd.f32 %v494_v10, %v187_v11 }
 0x109   :  { %v570_v13 = vpop.f32.mrf.mxu0 }
 0x10a   :  { %195 = vadd.xlane.f32.xlu0 %v188_v12  ;;  %v198_v15 = vmul.f32 %v188_v12, %v188_v12 }
 0x10b   :  { %v190_v14 = vpop.f32.mrf.mxu0 }
 0x10d   :  { %v571_v16 = vpop.f32.mrf.mxu0 }
 0x10e   :  { %199 = vadd.xlane.f32.xlu0 %v198_v15 }
 0x193   :  { %v196_v25 = vpop.xlane.xlu0 %195 }
 0x194   :  { %v197_v26 = vmul.f32 0.015625, %v196_v25 }
 0x196   :  { %v202_v28 = vmul.f32 %v197_v26, %v197_v26  ;;  %v204_v32 = vsub.f32 %v188_v12, %v197_v26 }
 0x197   :  { %v200_v27 = vpop.xlane.xlu0 %199 }
 0x198   :  { %v201_v29 = vmul.f32 0.015625, %v200_v27 }
 0x19a   :  { %v203_v30 = vsub.f32 %v201_v29, %v202_v28 }
 0x19c   :  { %v205_v31 = vadd.f32 1e-05, %v203_v30 }
 0x19e   :  { %644 = vrsqrt.f32 %v205_v31 }
 0x1ab   :  { %v645_v33 = vpop.eup %644 }
 0x1ac   :  { %v207_v35 = vmul.f32 %v645_v33, %v204_v32 }
 0x1ae   :  { %v214_v37 = vmul.f32 %v503_v34, %v207_v35 }
 0x1b0   :  { %v221_v38 = vadd.f32 %v504_v36, %v214_v37 }
 0x1b2   :  { %v222_v39 = vmax.f32 %v221_v38, 0.0 }
 0x1b4   :  { %v223_v40 = vpack.c.bf16 %v222_v39, %v222_v39 }
 0x1b6   :  { %589 = vmatmul.mubr.bf16.vlgmr.msra.gmra.mxu1 %v223_v40 }
 0x276   :  { %v329_v42 = vpop.f32.mrf.mxu1 }
 0x277   :  { %v330_v43 = vadd.f32 %v505_v41, %v329_v42 }
 0x278   :  { %v590_v44 = vpop.f32.mrf.mxu1 }
 0x279   :  { %337 = vadd.xlane.f32.xlu1 %v330_v43  ;;  %v340_v46 = vmul.f32 %v330_v43, %v330_v43 }
 0x27a   :  { %v332_v45 = vpop.f32.mrf.mxu1 }
 0x27c   :  { %v591_v47 = vpop.f32.mrf.mxu1 }
 0x27d   :  { %341 = vadd.xlane.f32.xlu1 %v340_v46 }
 0x302   :  { %v338_v56 = vpop.xlane.xlu1 %337 }
 0x303   :  { %v339_v57 = vmul.f32 0.03125, %v338_v56 }
 0x305   :  { %v344_v59 = vmul.f32 %v339_v57, %v339_v57  ;;  %v346_v63 = vsub.f32 %v330_v43, %v339_v57 }
 0x306   :  { %v342_v58 = vpop.xlane.xlu1 %341 }
 0x307   :  { %v343_v60 = vmul.f32 0.03125, %v342_v58 }
 0x309   :  { %v345_v61 = vsub.f32 %v343_v60, %v344_v59 }
 0x30b   :  { %v347_v62 = vadd.f32 1e-05, %v345_v61 }
 0x30d   :  { %646 = vrsqrt.f32 %v347_v62 }
 0x31a   :  { %v647_v1 = vpop.eup %646 }
 0x31b   :  { %v349_v3 = vmul.f32 %v647_v1, %v346_v63 }
 0x31d   :  { %v356_v4 = vmul.f32 %v514_v2, %v349_v3 }
 0x31f   :  { %v363_v5 = vadd.f32 %v515_v0, %v356_v4 }
 0x321   :  { %v364_v6 = vmax.f32 %v363_v5, 0.0 }
 0x323   :  { %v365_v7 = vpack.c.bf16 %v364_v6, %v364_v6 }
 0x325   :  { %609 = vmatmul.mubr.bf16.vlgmr.msra.gmra.mxu0 %v365_v7 }
 0x3e5   :  { %v471_v9 = vpop.f32.mrf.mxu0 }
 0x3e6   :  { %v472_v10 = vadd.f32 %v516_v8, %v471_v9 }
 0x3e7   :  { %v610_v11 = vpop.f32.mrf.mxu0 }
 0x3e8   :  { %477 = vst [vmem:[#allocation8] sm:$0xff] %v472_v10 }
 0x3e9   :  { %v474_v12 = vpop.f32.mrf.mxu0 }
 0x3ea   :  { %719 = shalt.err (!%p716_p5)
}
 0x3eb   :  { %487 = dma.vmem_to_hbm [thread:$0]  %s485_s24, 128, %s879_s11, [#allocation4]   ;;  %v611_v13 = vpop.f32.mrf.mxu0 }
 0x3ec   :  { %732 = dma.done.wait [#allocation4], 128  }
 0x3ed   :  { %733 = vsyncadd [#allocation4], 4294967168 }
 0x3ee   :  { %491 = vsyncpa [#allocation3], 1 }
 0x3ef   :  { %492 = vsyncpa [#allocation6], 1 }
 0x3f0   :  { %493 = vsyncpa [#allocation4], 1 }

</bundles_post_ra>
